<compile_context>
chip_gen: v7x
topology: tpu7x:2x2x1
jax: 0.10.0
libtpu: 0.0.40
codegen_flags: <defaults>
</compile_context>

<pallas_src>
import functools
import math

import jax
import jax.numpy as jnp
from jax.experimental import pallas as pl
from jax.experimental.pallas import tpu as pltpu

NUM_CLASS = 10


def _rup(x, m):
    return ((x + m - 1) // m) * m


@functools.lru_cache(maxsize=None)
def _vmem_limit():
    # Size the scoped VMEM budget per generation (v7x has only 64 MiB physical).
    try:
        cap = int(pltpu.get_tpu_info().vmem_capacity_bytes)
    except Exception:
        cap = 64 * 1024 * 1024
    return int(min(cap * 3 // 4, 100 * 1024 * 1024))


def _row_tile(n, cap=8):
    # largest divisor of n that is <= cap (bounds per-step unrolling)
    for t in range(min(n, cap), 0, -1):
        if n % t == 0:
            return t
    return 1


def _choose_tm(M, cap=512):
    # Prefer the largest multiple-of-8 divisor of M (<= cap) that still leaves
    # >= 2 grid steps (so the "parallel" axis shards across 2 TCs on v7x);
    # fall back to the largest divisor, then to padding M up to 8.
    best = best2 = None
    for t in range(8, min(M, cap) + 1, 8):
        if M % t == 0:
            best = t
            if M // t >= 2:
                best2 = t
    if best2 is not None:
        return best2, M
    if best is not None:
        return best, M
    Mp = _rup(M, 8)
    tm = min(cap, Mp)
    return tm, _rup(Mp, tm)


# ----------------------------------------------------------------------------
# Pallas kernels
# ----------------------------------------------------------------------------
def conv3x3_s1_kernel(*refs, relu, has_res):
    # Tap-accumulation 3x3 stride-1 conv.
    #   x_ref: (1, H+2, W+2, Cin)  whole padded image, resident across rows
    #   w_ref: (9, Cin, Cout)      BN scale folded, resident
    #   s_ref: (1, Cout)           BN shift (f32)
    #   r_ref: (1, tr, W, Cout)    optional residual (identity) tile
    #   o_ref: (1, tr, W, Cout)
    if has_res:
        x_ref, w_ref, s_ref, r_ref, o_ref = refs
    else:
        x_ref, w_ref, s_ref, o_ref = refs
        r_ref = None
    _, tr, W, Cout = o_ref.shape
    base = pl.program_id(1) * tr
    shift = s_ref[...]                                     # (1, Cout) f32
    for h in range(tr):                                    # static unroll
        acc = jnp.zeros((W, Cout), jnp.float32)
        for i in range(3):
            row = x_ref[0, base + h + i]                   # (W+2, Cin) bf16
            for j in range(3):
                acc = acc + jnp.dot(row[j:j + W, :], w_ref[3 * i + j],
                                    preferred_element_type=jnp.float32)
        y = acc + shift
        if has_res:
            y = y + r_ref[0, h].astype(jnp.float32)
        if relu:
            y = jnp.maximum(y, 0.0)
        o_ref[0, h] = y.astype(o_ref.dtype)


def maxpool_kernel(xe_ref, xo_ref, o_ref):
    # 3x3 / stride-2 / pad-1 maxpool.  xe/xo are the even/odd column planes of
    # the spatially padded input (whole image resident, read once).  Input is
    # post-ReLU (>= 0) so zero padding is equivalent to -inf padding.
    _, tr, Wo, _ = o_ref.shape
    base = pl.program_id(1) * tr
    for h in range(tr):
        r0 = 2 * (base + h)
        me = jnp.maximum(jnp.maximum(xe_ref[0, r0], xe_ref[0, r0 + 1]),
                         xe_ref[0, r0 + 2])                # (Wpe, C)
        mo = jnp.maximum(jnp.maximum(xo_ref[0, r0], xo_ref[0, r0 + 1]),
                         xo_ref[0, r0 + 2])                # (Wpo, C)
        o_ref[0, h] = jnp.maximum(jnp.maximum(me[0:Wo, :], mo[0:Wo, :]),
                                  me[1:Wo + 1, :])


def matmul_bn_kernel(a_ref, b_ref, s_ref, o_ref, *, relu):
    # o = relu?( A @ B_scalefolded + shift )   (im2col / 1x1-downsample path)
    acc = jnp.dot(a_ref[...], b_ref[...], preferred_element_type=jnp.float32)
    y = acc + s_ref[...]
    if relu:
        y = jnp.maximum(y, 0.0)
    o_ref[...] = y.astype(o_ref.dtype)


def head_kernel(x_ref, w_ref, b_ref, o_ref, *, num_class):
    # global average pool -> linear -> softmax (over classes), all in f32
    feat = jnp.mean(x_ref[...].astype(jnp.float32), axis=1)           # (N, C)
    logits = jnp.dot(feat, w_ref[...],
                     preferred_element_type=jnp.float32) + b_ref[...]
    col = jax.lax.broadcasted_iota(jnp.int32, logits.shape, 1)
    logits = jnp.where(col < num_class, logits, -jnp.inf)             # mask pad cols
    m = jnp.max(logits, axis=-1, keepdims=True)
    e = jnp.exp(logits - m)
    o_ref[...] = e / jnp.sum(e, axis=-1, keepdims=True)


# ----------------------------------------------------------------------------
# Pallas wrappers
# ----------------------------------------------------------------------------
def conv3x3_s1(x, params, relu, residual=None):
    """Stride-1 3x3 conv + BN(+residual)(+ReLU) via in-kernel tap accumulation."""
    w9, shift = params                               # (9, Cin, Cout), (1, Cout)
    N, H, W, Cin = x.shape
    Cout = w9.shape[-1]
    xp = jnp.pad(x.astype(jnp.bfloat16), ((0, 0), (1, 1), (1, 1), (0, 0)))
    tr = _row_tile(H)
    args = [xp, w9, shift]
    in_specs = [
        pl.BlockSpec((1, H + 2, W + 2, Cin), lambda n, r: (n, 0, 0, 0)),
        pl.BlockSpec((9, Cin, Cout), lambda n, r: (0, 0, 0)),   # resident
        pl.BlockSpec((1, Cout), lambda n, r: (0, 0)),           # resident
    ]
    if residual is not None:
        args.append(residual.astype(jnp.bfloat16))
        in_specs.append(pl.BlockSpec((1, tr, W, Cout), lambda n, r: (n, r, 0, 0)))
    return pl.pallas_call(
        functools.partial(conv3x3_s1_kernel, relu=relu,
                          has_res=residual is not None),
        out_shape=jax.ShapeDtypeStruct((N, H, W, Cout), jnp.bfloat16),
        grid=(N, H // tr),
        in_specs=in_specs,
        out_specs=pl.BlockSpec((1, tr, W, Cout), lambda n, r: (n, r, 0, 0)),
        compiler_params=pltpu.CompilerParams(
            dimension_semantics=("parallel", "parallel"),
            vmem_limit_bytes=_vmem_limit()),
    )(*args)


def maxpool_3x3_s2(x):
    # NOTE: relies on x >= 0 (post-ReLU) so zero padding == -inf padding.
    N, H, W, C = x.shape
    Ho = (H - 1) // 2 + 1
    Wo = (W - 1) // 2 + 1
    xp = jnp.pad(x, ((0, 0), (1, 1), (1, 1), (0, 0)))
    xe = xp[:, :, 0::2, :]                           # even padded columns
    xo = xp[:, :, 1::2, :]                           # odd  padded columns
    Hp, Wpe, Wpo = H + 2, xe.shape[2], xo.shape[2]
    tr = _row_tile(Ho)
    return pl.pallas_call(
        maxpool_kernel,
        out_shape=jax.ShapeDtypeStruct((N, Ho, Wo, C), x.dtype),
        grid=(N, Ho // tr),
        in_specs=[pl.BlockSpec((1, Hp, Wpe, C), lambda n, r: (n, 0, 0, 0)),
                  pl.BlockSpec((1, Hp, Wpo, C), lambda n, r: (n, 0, 0, 0))],
        out_specs=pl.BlockSpec((1, tr, Wo, C), lambda n, r: (n, r, 0, 0)),
        compiler_params=pltpu.CompilerParams(
            dimension_semantics=("parallel", "parallel"),
            vmem_limit_bytes=_vmem_limit()),
    )(xe, xo)


def pallas_matmul_bn(a, b, shift, relu):
    """a: (M, K) bf16, b: (K, Cout) bf16 (scale folded), shift: (1, Cout) f32."""
    M, K = a.shape
    Kb, Np = b.shape
    assert K == Kb, (K, Kb)
    tm, Mp = _choose_tm(M)
    a_p = a.astype(jnp.bfloat16)
    if Mp > M:
        a_p = jnp.pad(a_p, ((0, Mp - M), (0, 0)))
    out = pl.pallas_call(
        functools.partial(matmul_bn_kernel, relu=relu),
        out_shape=jax.ShapeDtypeStruct((Mp, Np), jnp.bfloat16),
        grid=(Mp // tm,),
        in_specs=[pl.BlockSpec((tm, K), lambda i: (i, 0)),
                  pl.BlockSpec((K, Np), lambda i: (0, 0)),   # resident
                  pl.BlockSpec((1, Np), lambda i: (0, 0))],  # resident
        out_specs=pl.BlockSpec((tm, Np), lambda i: (i, 0)),
        compiler_params=pltpu.CompilerParams(
            dimension_semantics=("parallel",),
            vmem_limit_bytes=_vmem_limit()),
    )(a_p, b, shift)
    return out[:M] if Mp > M else out


def im2col(x, kh, kw, stride, pad):
    # plain-JAX glue for the few strided convs (tap-major / channel-minor).
    N, H, W, C = x.shape
    xp = jnp.pad(x, ((0, 0), (pad, pad), (pad, pad), (0, 0)))
    Ho = (H + 2 * pad - kh) // stride + 1
    Wo = (W + 2 * pad - kw) // stride + 1
    ps = []
    for i in range(kh):
        for j in range(kw):
            ps.append(jax.lax.slice(
                xp,
                (0, i, j, 0),
                (N, i + stride * (Ho - 1) + 1, j + stride * (Wo - 1) + 1, C),
                (1, stride, stride, 1)))
    a = jnp.concatenate(ps, axis=-1).reshape(N * Ho * Wo, kh * kw * C)
    return a, (N, Ho, Wo)


def conv_bn_mm(x, params, kh, kw, stride, pad, relu):
    # im2col+matmul path: conv1 (7x7/s2), the three 3x3/s2 convs and the
    # 1x1/s2 downsamples.  TODO(synk): tap-accumulate the 3x3/s2 convs too.
    w, shift = params                                 # w: (kh*kw, Cin, Cout)
    Cout = w.shape[-1]
    if kh == 1 and kw == 1 and pad == 0:
        xs = x[:, ::stride, ::stride, :] if stride > 1 else x
        N, Ho, Wo, C = xs.shape
        a = xs.reshape(N * Ho * Wo, C)
    else:
        a, (N, Ho, Wo) = im2col(x, kh, kw, stride, pad)
    w_mat = w.reshape(-1, Cout)                       # free reshape (leading dims)
    out = pallas_matmul_bn(a, w_mat, shift, relu=relu)
    return out.reshape(N, Ho, Wo, Cout)


def head(feats, w_fc_p, b_fc_p, num_class):
    N, HW, C = feats.shape
    ncp = w_fc_p.shape[1]
    out = pl.pallas_call(
        functools.partial(head_kernel, num_class=num_class),
        out_shape=jax.ShapeDtypeStruct((N, ncp), jnp.float32),
        grid=(1,),
        in_specs=[
            pl.BlockSpec((N, HW, C), lambda i: (0, 0, 0)),
            pl.BlockSpec((C, ncp), lambda i: (0, 0)),
            pl.BlockSpec((1, ncp), lambda i: (0, 0)),
        ],
        out_specs=pl.BlockSpec((N, ncp), lambda i: (0, 0)),
        compiler_params=pltpu.CompilerParams(vmem_limit_bytes=_vmem_limit()),
    )(feats, w_fc_p, b_fc_p)
    return out[:, :num_class]


# ----------------------------------------------------------------------------
# Parameter construction (deterministic, synthetic — BN folded, inference mode)
# ----------------------------------------------------------------------------
def make_conv_bn(key, cout, cin, kh, kw):
    k1, k2, k3, k4, k5 = jax.random.split(key, 5)
    w = jax.random.normal(k1, (cout, cin, kh, kw), jnp.float32) \
        * (1.0 / math.sqrt(cin * kh * kw))
    gamma = jax.random.uniform(k2, (cout,), minval=0.5, maxval=1.5)
    beta = jax.random.normal(k3, (cout,)) * 0.1
    mean = jax.random.normal(k4, (cout,)) * 0.1
    var = jax.random.uniform(k5, (cout,), minval=0.5, maxval=1.5)
    scale = gamma / jnp.sqrt(var + 1e-5)
    shift = beta - mean * scale

    # (cout,cin,kh,kw) -> (kh,kw,cin,cout), fold BN scale into the weights.
    wt = jnp.transpose(w, (2, 3, 1, 0)) * scale[None, None, None, :]
    cin_p = 8 if cin == 3 else cin                  # only the RGB stem gets K padding
    if cin_p != cin:
        wt = jnp.pad(wt, ((0, 0), (0, 0), (0, cin_p - cin), (0, 0)))
    w_taps = wt.reshape(kh * kw, cin_p, cout).astype(jnp.bfloat16)
    shift_p = shift.reshape(1, cout).astype(jnp.float32)
    return (w_taps, shift_p)


def init_params(key, num_class):
    keys = jax.random.split(key, 64)
    ki = iter(keys)
    params = {'conv1': make_conv_bn(next(ki), 64, 3, 7, 7)}
    in_c = 64
    stages = [(64, 1), (128, 2), (256, 2), (512, 2)]
    for si, (c, s) in enumerate(stages):
        blocks = []
        for bi in range(2):
            stride = s if bi == 0 else 1
            p1 = make_conv_bn(next(ki), c, in_c, 3, 3)
            p2 = make_conv_bn(next(ki), c, c, 3, 3)
            down = None
            if stride != 1 or in_c != c:
                down = make_conv_bn(next(ki), c, in_c, 1, 1)
            blocks.append((p1, p2, down, stride))
            in_c = c
        params[f'layer{si + 1}'] = blocks
    kf1, kf2 = jax.random.split(next(ki))
    w_fc = jax.random.normal(kf1, (512, num_class)) * (1.0 / math.sqrt(512))
    b_fc = jax.random.normal(kf2, (num_class,)) * 0.01
    ncp = _rup(num_class, 128)
    w_fc_p = jnp.pad(w_fc, ((0, 0), (0, ncp - num_class))).astype(jnp.float32)
    b_fc_p = jnp.pad(b_fc, (0, ncp - num_class)).reshape(1, ncp).astype(jnp.float32)
    params['fc'] = (w_fc_p, b_fc_p)
    return params


# ----------------------------------------------------------------------------
# ClassifierTwo forward
# ----------------------------------------------------------------------------
def basic_block(x, p1, p2, down, stride):
    identity = x
    if stride == 1:
        out = conv3x3_s1(x, p1, relu=True)
    else:
        out = conv_bn_mm(x, p1, 3, 3, stride, 1, relu=True)
    if down is not None:
        identity = conv_bn_mm(x, down, 1, 1, stride, 0, relu=False)
    # conv2 is always stride-1: residual add + ReLU fused into its epilogue.
    return conv3x3_s1(out, p2, relu=True, residual=identity)


def classifier_two_forward(params, x_nchw, num_class=NUM_CLASS):
    x = jnp.transpose(x_nchw, (0, 2, 3, 1)).astype(jnp.bfloat16)   # NCHW -> NHWC
    x = jnp.pad(x, ((0, 0), (0, 0), (0, 0), (0, 8 - x.shape[-1])))  # RGB 3 -> 8 lanes
    # TODO(synk): space-to-depth conv1 path instead of 49-tap im2col.
    x = conv_bn_mm(x, params['conv1'], 7, 7, 2, 3, relu=True)
    x = maxpool_3x3_s2(x)                                          # single-read kernel
    for li in range(1, 5):
        for (p1, p2, down, stride) in params[f'layer{li}']:
            x = basic_block(x, p1, p2, down, stride)
    N, H, W, C = x.shape                        # C == 512
    feats = x.reshape(N, H * W, C)              # adaptive-avg-pool done in head
    w_fc, b_fc = params['fc']
    return head(feats, w_fc, b_fc, num_class)   # (N, num_class) softmax probs


if __name__ == "__main__":
    key = jax.random.PRNGKey(0)
    kp, kx = jax.random.split(key)
    params = init_params(kp, NUM_CLASS)
    # ResNet18 requires 3 input channels; small 16x16 spatial, batch 2.
    x = jax.random.normal(kx, (2, 3, 16, 16), jnp.float32)
    probs = classifier_two_forward(params, x)
    probs = jax.block_until_ready(probs)
    assert probs.shape == (2, NUM_CLASS)
    assert bool(jnp.all(jnp.abs(jnp.sum(probs, axis=-1) - 1.0) < 1e-4))
    print("KERNEL_OK")
</pallas_src>

<mosaic_0001>
module attributes {stable_mosaic.version = 11 : i64} {
  func.func @matmul_bn_kernel(%arg0: i32, %arg1: memref<64x392xbf16, #tpu.memory_space<vmem>>, %arg2: memref<392x64xbf16, #tpu.memory_space<vmem>>, %arg3: memref<1x64xf32, #tpu.memory_space<vmem>>, %arg4: memref<64x64xbf16, #tpu.memory_space<vmem>>) attributes {dimension_semantics = [#tpu.dimension_semantics<parallel>], iteration_bounds = array<i64: 2>, scalar_prefetch = 0 : i64, scratch_operands = 0 : i64, tpu.core_type = #tpu.core_type<tc>, window_params = [{transform_indices = @transform_0, window_bounds = array<i64: 64, 392>}, {pipeline_mode = #tpu.pipeline_mode<synchronous>, transform_indices = @transform_1, window_bounds = array<i64: 392, 64>}, {pipeline_mode = #tpu.pipeline_mode<synchronous>, transform_indices = @transform_2, window_bounds = array<i64: 1, 64>}, {transform_indices = @transform_3, window_bounds = array<i64: 64, 64>}]} {
    %c0 = arith.constant 0 : index
    %c0_0 = arith.constant 0 : index
    %0 = vector.load %arg1[%c0, %c0_0] : memref<64x392xbf16, #tpu.memory_space<vmem>>, vector<64x392xbf16>
    %c0_1 = arith.constant 0 : index
    %c0_2 = arith.constant 0 : index
    %1 = vector.load %arg2[%c0_1, %c0_2] : memref<392x64xbf16, #tpu.memory_space<vmem>>, vector<392x64xbf16>
    %cst = arith.constant dense<0.000000e+00> : vector<64x64xf32>
    %2 = tpu.matmul %0, %1, %cst {dimension_numbers = #tpu.dot_dimension_numbers<[1], [0], [0], [1], [0, 0, 1, 1], [], []>} : vector<64x392xbf16>, vector<392x64xbf16>, vector<64x64xf32> -> vector<64x64xf32>
    %c0_3 = arith.constant 0 : index
    %c0_4 = arith.constant 0 : index
    %3 = vector.load %arg3[%c0_3, %c0_4] : memref<1x64xf32, #tpu.memory_space<vmem>>, vector<1x64xf32>
    %4 = vector.broadcast %3 : vector<1x64xf32> to vector<64x64xf32>
    %5 = arith.addf %2, %4 : vector<64x64xf32>
    %cst_5 = arith.constant 0.000000e+00 : f32
    %6 = vector.broadcast %cst_5 : f32 to vector<64x64xf32>
    %7 = arith.maximumf %5, %6 : vector<64x64xf32>
    %8 = arith.truncf %7 : vector<64x64xf32> to vector<64x64xbf16>
    %c0_6 = arith.constant 0 : index
    %c0_7 = arith.constant 0 : index
    %9 = vector.load %arg4[%c0_6, %c0_7] : memref<64x64xbf16, #tpu.memory_space<vmem>>, vector<64x64xbf16>
    tpu.vector_store %arg4[%c0_6, %c0_7], %8 {strides = array<i32>} : memref<64x64xbf16, #tpu.memory_space<vmem>>, vector<64x64xbf16>,
    return
  }
  func.func @transform_0(%arg0: i32) -> (i32, i32) {
    %c0_i32 = arith.constant 0 : i32
    %c0_i32_0 = arith.constant 0 : i32
    return %arg0, %c0_i32 : i32, i32
  }
  func.func @transform_1(%arg0: i32) -> (i32, i32) {
    %c0_i32 = arith.constant 0 : i32
    %c0_i32_0 = arith.constant 0 : i32
    %c0_i32_1 = arith.constant 0 : i32
    return %c0_i32, %c0_i32_0 : i32, i32
  }
  func.func @transform_2(%arg0: i32) -> (i32, i32) {
    %c0_i32 = arith.constant 0 : i32
    %c0_i32_0 = arith.constant 0 : i32
    %c0_i32_1 = arith.constant 0 : i32
    return %c0_i32, %c0_i32_0 : i32, i32
  }
  func.func @transform_3(%arg0: i32) -> (i32, i32) {
    %c0_i32 = arith.constant 0 : i32
    %c0_i32_0 = arith.constant 0 : i32
    return %arg0, %c0_i32 : i32, i32
  }
}

</mosaic_0001>

<bundles_post_ra>
// kernel: tpu_custom_call.1
= control target key start
LH: loop header
LB: loop body
LE: loop exit
PB: predicated region body
PF: predicated region fallthrough
CT: control target
= control target key end

     0   :  { %s927_s12 = smov 0   ;;  %s1085_s0 = inlined_call_operand.vmem [shape: bf16[128,392], index: 0, kind: input, shape index: {}]   ;;  %s1086_s1 = inlined_call_operand.vmem [shape: bf16[392,64], index: 1, kind: input, shape index: {}]   ;;  %s1087_s2 = inlined_call_operand.vmem [shape: f32[1,64], index: 2, kind: input, shape index: {}]   ;;  %s1088_s3 = inlined_call_operand.vmem [shape: bf16[128,64], index: 3, kind: output, shape index: {}]  }
   0x1 LB: > { %s725_s13 = sadd.s32 4294967295, %s904_s12   ;;  %p729_p0 = scmp.ge.s32.totalorder %s904_s12, 1  ;;  %s904_s12 = sphi %s927_s12, %s13_s12  }
   0x2   : > { %p139_p1 = scmp.lt.s32.totalorder %s904_s12, 3 }
   0x4   : > { %p140_p2 = pnand %p729_p0, %p139_p1 }
   0x5   : > { %v849_v0 = vld [vmem:[%s1086_s1 + $0x40] sm:$0xff] (!%p140_p2)   ;;  %v906_v1 = vmov (!%p140_p2), 0   ;;  %v852_v4 = vld [vmem:[%s1086_s1 + $0x48] sm:$0xff] (!%p140_p2)   ;;  %v855_v7 = vld [vmem:[%s1086_s1 + $0x50] sm:$0xff] (!%p140_p2)   ;;  %s730_s5 = sshll.u32 (!%p140_p2), %s725_s13, 3  ;;  %vm473_vm0 = vcmask (!%p140_p2), 64512  }
   0x6   : > { %143 = sbr.rel (%p140_p2) target bundleno = 289 (0x121), region = 32  ;;  %555 = vmatprep.subr.bf16.mxu1 (!%p140_p2), %v906_v1  ;;  %v850_v2 = vld [vmem:[%s1086_s1 + $0x80] sm:$0xff] (!%p140_p2)   ;;  %800 = vmatprep.subr.bf16.mxu0 (!%p140_p2), %v849_v0  ;;  %v853_v5 = vld [vmem:[%s1086_s1 + $0x88] sm:$0xff] (!%p140_p2)   ;;  %v856_v8 = vld [vmem:[%s1086_s1 + $0x90] sm:$0xff] (!%p140_p2)   ;;  %p165_p3 = scmp.lt.s32.totalorder (!%p140_p2), %s730_s5, 15  ;;  %vm486_vm1 = vcmask (!%p140_p2), 1043456  }
   0x7   : > { %v851_v3 = vld [vmem:[%s1086_s1] sm:$0xff] (!%p140_p2)   ;;  %556 = vmatpush1.bf16.msra.mxu1 (!%p140_p2), %v850_v2  ;;  %v854_v6 = vld [vmem:[%s1086_s1 + $0x8] sm:$0xff] (!%p140_p2)   ;;  %v857_v9 = vld [vmem:[%s1086_s1 + $0x10] sm:$0xff] (!%p140_p2)   ;;  %vm660_vm2 = vcmask (!%p140_p2), 519168  }
   0x8   : > { %801 = vmatpush3.bf16.msra.mxu0 (!%p140_p2), %v851_v3  ;;  %557 = vmatprep.subr.bf16.mxu1 (!%p140_p2), %v906_v1  ;;  %v858_v10 = vld [vmem:[%s1086_s1 + $0x58] sm:$0xff] (!%p140_p2)   ;;  %v861_v13 = vld [vmem:[%s1086_s1 + $0x60] sm:$0xff] (!%p140_p2)   ;;  %v864_v16 = vld [vmem:[%s1086_s1 + $0x68] sm:$0xff] (!%p140_p2)  }
   0x9   : > { %802 = vmatprep.subr.bf16.mxu0 (!%p140_p2), %v852_v4  ;;  %v859_v11 = vld [vmem:[%s1086_s1 + $0x98] sm:$0xff] (!%p140_p2)   ;;  %v862_v14 = vld [vmem:[%s1086_s1 + $0xa0] sm:$0xff] (!%p140_p2)   ;;  %v865_v17 = vld [vmem:[%s1086_s1 + $0xa8] sm:$0xff] (!%p140_p2)  }
   0xa   : > { %v860_v12 = vld [vmem:[%s1086_s1 + $0x18] sm:$0xff] (!%p140_p2)   ;;  %v863_v15 = vld [vmem:[%s1086_s1 + $0x20] sm:$0xff] (!%p140_p2)   ;;  %v866_v18 = vld [vmem:[%s1086_s1 + $0x28] sm:$0xff] (!%p140_p2)  }
   0xb   : > { %558 = vmatpush1.bf16.msra.mxu1 (!%p140_p2), %v853_v5  ;;  %v867_v19 = vld [vmem:[%s1086_s1 + $0x70] sm:$0xff] (!%p140_p2)   ;;  %v870_v22 = vld [vmem:[%s1086_s1 + $0x78] sm:$0xff] (!%p140_p2)   ;;  %v876_v27 = vld [vmem:[%s1086_s1 + $0xc0] ss:$0 sps:$4 sm:$0xff] (!%p140_p2)  }
   0xc   : > { %803 = vmatpush3.bf16.msra.mxu0 (!%p140_p2), %v854_v6  ;;  %559 = vmatprep.subr.bf16.mxu1 (!%p140_p2), %v906_v1  ;;  %v868_v20 = vld [vmem:[%s1086_s1 + $0xb0] sm:$0xff] (!%p140_p2)   ;;  %v871_v24 = vld [vmem:[%s1086_s1 + $0xb8] sm:$0xff] (!%p140_p2)   ;;  %v488_v29 = vsel (!%p140_p2), %vm486_vm1, %v876_v27, 0  ;;  %v1050_v45 = vld [vmem:[%s1087_s2] ss:$0 sm:$0xff] (!%p140_p2) }
   0xd   : > { %804 = vmatprep.subr.bf16.mxu0 %v855_v7  ;;  %s1090_s5 = smov (!%p165_p3, %s730_s5), 15  ;;  %v869_v21 = vld [vmem:[%s1086_s1 + $0x30] sm:$0xff]   ;;  %v872_v26 = vld [vmem:[%s1086_s1 + $0x38] sm:$0xff]  }
   0xe   : > { %s791_s23 = sshll.u32 %s1090_s5, 4  ;;  %s734_s20 = sshll.u32 %s1090_s5, 2 }
   0xf   : > { %560 = vmatpush1.bf16.msra.mxu1 %v856_v8  ;;  %s1004_s30 = scalar_lea.vmem %s1085_s0, %s791_s23  ;;  %s1058_s23 = scalar_lea.vmem %s1088_s3, %s734_s20 }
  0x10   : > { %805 = vmatpush3.bf16.msra.mxu0 %v857_v9  ;;  %561 = vmatprep.subr.bf16.mxu1 %v906_v1  ;;  %v875_v23 = vld [vmem:[%s1004_s30 + $0x4] ss:$16 sps:$4 sm:$0xff]   ;;  %v879_v25 = vld [vmem:[%s1004_s30 + $0xc] ss:$16 sps:$4 sm:$0xff]   ;;  %v873_v28 = vld [vmem:[%s1004_s30] ss:$16 sps:$4 sm:$0xff]  }
  0x11   : > { %806 = vmatprep.subr.bf16.mxu0 %v858_v10  ;;  %522 = vmatprep.mubr.bf16.mxu0 %v875_v23  ;;  %v880_v30 = vld [vmem:[%s1004_s30 + $0x24] ss:$16 sps:$4 sm:$0xff]   ;;  %v877_v31 = vld [vmem:[%s1004_s30 + $0x8] ss:$16 sps:$4 sm:$0xff]   ;;  %v883_v32 = vld [vmem:[%s1004_s30 + $0x2c] ss:$16 sps:$4 sm:$0xff]  }
  0x12   : > { %777 = vmatprep.mubr.msk.bf16.mxu1 %vm473_vm0, %v879_v25  ;;  %v882_v33 = vld [vmem:[%s1004_s30 + $0x20] ss:$16 sps:$4 sm:$0xff]   ;;  %v886_v34 = vld [vmem:[%s1004_s30 + $0x44] ss:$16 sps:$4 sm:$0xff]   ;;  %v885_v35 = vld [vmem:[%s1004_s30 + $0x28] ss:$16 sps:$4 sm:$0xff]  }
  0x13   : > { %562 = vmatpush1.bf16.msra.mxu1 %v859_v11  ;;  %v889_v36 = vld [vmem:[%s1004_s30 + $0x4c] ss:$16 sps:$4 sm:$0xff]   ;;  %v888_v37 = vld [vmem:[%s1004_s30 + $0x40] ss:$16 sps:$4 sm:$0xff]   ;;  %v892_v38 = vld [vmem:[%s1004_s30 + $0x64] ss:$16 sps:$4 sm:$0xff]  }
  0x14   : > { %807 = vmatpush3.bf16.msra.mxu0 %v860_v12  ;;  %563 = vmatprep.subr.bf16.mxu1 %v906_v1  ;;  %v891_v39 = vld [vmem:[%s1004_s30 + $0x48] ss:$16 sps:$4 sm:$0xff]   ;;  %v895_v40 = vld [vmem:[%s1004_s30 + $0x6c] ss:$16 sps:$4 sm:$0xff]   ;;  %v894_v41 = vld [vmem:[%s1004_s30 + $0x60] ss:$16 sps:$4 sm:$0xff]  }
  0x15   : > { %808 = vmatprep.subr.bf16.mxu0 %v861_v13  ;;  %v897_v42 = vld [vmem:[%s1004_s30 + $0x68] ss:$16 sps:$4 sm:$0xff]  }
  0x17   : > { %564 = vmatpush1.bf16.msra.mxu1 %v862_v14 }
  0x18   : > { %809 = vmatpush3.bf16.msra.mxu0 %v863_v15  ;;  %565 = vmatprep.subr.bf16.mxu1 %v906_v1 }
  0x19   : > { %810 = vmatprep.subr.bf16.mxu0 %v864_v16 }
  0x1b   : > { %566 = vmatpush1.bf16.msra.mxu1 %v865_v17 }
  0x1c   : > { %811 = vmatpush3.bf16.msra.mxu0 %v866_v18  ;;  %567 = vmatprep.subr.bf16.mxu1 %v906_v1 }
  0x1d   : > { %812 = vmatprep.subr.bf16.mxu0 %v867_v19 }
  0x1f   : > { %568 = vmatpush1.bf16.msra.mxu1 %v868_v20 }
  0x20   : > { %813 = vmatpush3.bf16.msra.mxu0 %v869_v21  ;;  %569 = vmatprep.subr.bf16.mxu1 %v906_v1 }
  0x21   : > { %814 = vmatprep.subr.bf16.mxu0 %v870_v22 }
  0x23   : > { %570 = vmatpush1.bf16.msra.mxu1 %v871_v24 }
  0x24   : > { %815 = vmatpush3.bf16.msra.mxu0 %v872_v26  ;;  %571 = vmatprep.subr.bf16.mxu1 %v906_v1 }
  0x27   : > { %523 = vmatmul.mubr.bf16.vlgmr.msra.gmra.mrb[0].mxu0 %v873_v28  ;;  %572 = vmatpush1.bf16.msra.mxu1 %v488_v29 }
  0x28   : > { %530 = vmatprep.mubr.bf16.mxu0 %v880_v30 }
  0x2a   : > { %588 = vmatmul.mubr.bf16.vlgmr.msra.gmra.mrb[0].mxu1 %v877_v31 }
  0x2b   : > { %778 = vmatprep.mubr.msk.bf16.mxu1 %vm473_vm0, %v883_v32 }
  0x2f   : > { %531 = vmatmul.mubr.bf16.gmra.mrb[4].mxu0 %v882_v33 }
  0x30   : > { %538 = vmatprep.mubr.bf16.mxu0 %v886_v34 }
  0x32   : > { %596 = vmatmul.mubr.bf16.gmra.mrb[4].mxu1 %v885_v35 }
  0x33   : > { %779 = vmatprep.mubr.msk.bf16.mxu1 %vm473_vm0, %v889_v36 }
  0x37   : > { %539 = vmatmul.mubr.bf16.gmra.mrb[8].mxu0 %v888_v37 }
  0x38   : > { %546 = vmatprep.mubr.bf16.mxu0 %v892_v38 }
  0x3a   : > { %604 = vmatmul.mubr.bf16.gmra.mrb[8].mxu1 %v891_v39 }
  0x3b   : > { %780 = vmatprep.mubr.msk.bf16.mxu1 %vm473_vm0, %v895_v40 }
  0x3f   : > { %547 = vmatmul.mubr.bf16.gmra.mrb[12].mxu0 %v894_v41 }
  0x42   : > { %612 = vmatmul.mubr.bf16.gmra.mrb[12].mxu1 %v897_v42 }
  0xfa   : > { %v816_v43 = vpop.f32.mrb[0].mxu0 }
  0xfb   : > { %v817_v44 = vpop.f32.mrb[1].mxu0 }
  0xfc   : > { %v818_v46 = vadd.f32 %v817_v44, %v816_v43  ;;  %v819_v47 = vpop.f32.mrb[2].mxu0 }
  0xfd   : > { %v820_v48 = vpop.f32.mrb[3].mxu0  ;;  %v589_v49 = vpop.f32.mrb[0].mxu1 }
  0xfe   : > { %v821_v50 = vadd.f32 %v820_v48, %v819_v47  ;;  %v525_v51 = vadd.f32 %v818_v46, %v1050_v45  ;;  %v591_v52 = vpop.f32.mrb[1].mxu1 }
  0xff   : > { %v592_v53 = vpop.f32.mrb[2].mxu1 }
 0x100   : > { %v590_v54 = vadd.f32 %v589_v49, %v525_v51  ;;  %v528_v55 = vadd.f32 %v821_v50, %v1050_v45  ;;  %v594_v56 = vpop.f32.mrb[3].mxu1 }
 0x102   : > { %v620_v57 = vmax.f32 %v590_v54, 0.0  ;;  %v593_v58 = vadd.f32 %v592_v53, %v528_v55  ;;  %v822_v59 = vpop.f32.mrb[4].mxu0 }
 0x103   : > { %v823_v60 = vpop.f32.mrb[5].mxu0 }
 0x104   : > { %v792_v61 = vpack.c.bf16 %v620_v57, %v620_v57  ;;  %v621_v62 = vmax.f32 %v593_v58, 0.0  ;;  %v824_v63 = vadd.f32 %v823_v60, %v822_v59  ;;  %v825_v0 = vpop.f32.mrb[6].mxu0 }
 0x105   : > { %v826_v1 = vpop.f32.mrb[7].mxu0  ;;  %v597_v2 = vpop.f32.mrb[4].mxu1 }
 0x106   : > { %661 = vst.msk [vmem:[%s1058_s23] sm:$0xf] %vm660_vm2, %v792_v61  ;;  %v793_v3 = vpack.c.bf16 %v621_v62, %v621_v62  ;;  %v827_v4 = vadd.f32 %v826_v1, %v825_v0  ;;  %v533_v5 = vadd.f32 %v824_v63, %v1050_v45  ;;  %v599_v6 = vpop.f32.mrb[5].mxu1 }
 0x107   : > { %v600_v7 = vpop.f32.mrb[6].mxu1 }
 0x108   : > { %662 = vst.msk [vmem:[%s1058_s23 + $0x4] sm:$0xf] %vm660_vm2, %v793_v3  ;;  %v598_v8 = vadd.f32 %v597_v2, %v533_v5  ;;  %v536_v9 = vadd.f32 %v827_v4, %v1050_v45  ;;  %v602_v10 = vpop.f32.mrb[7].mxu1 }
 0x10a   : > { %v622_v11 = vmax.f32 %v598_v8, 0.0  ;;  %v601_v12 = vadd.f32 %v600_v7, %v536_v9  ;;  %v828_v13 = vpop.f32.mrb[8].mxu0 }
 0x10b   : > { %v829_v14 = vpop.f32.mrb[9].mxu0 }
 0x10c   : > { %v794_v15 = vpack.c.bf16 %v622_v11, %v622_v11  ;;  %v623_v16 = vmax.f32 %v601_v12, 0.0  ;;  %v830_v17 = vadd.f32 %v829_v14, %v828_v13  ;;  %v831_v18 = vpop.f32.mrb[10].mxu0 }
 0x10d   : > { %v832_v19 = vpop.f32.mrb[11].mxu0  ;;  %v605_v20 = vpop.f32.mrb[8].mxu1 }
 0x10e   : > { %663 = vst.msk [vmem:[%s1058_s23 + $0x8] sm:$0xf] %vm660_vm2, %v794_v15  ;;  %v795_v21 = vpack.c.bf16 %v623_v16, %v623_v16  ;;  %v833_v22 = vadd.f32 %v832_v19, %v831_v18  ;;  %v541_v23 = vadd.f32 %v830_v17, %v1050_v45  ;;  %v607_v24 = vpop.f32.mrb[9].mxu1 }
 0x10f   : > { %v608_v25 = vpop.f32.mrb[10].mxu1 }
 0x110   : > { %664 = vst.msk [vmem:[%s1058_s23 + $0xc] sm:$0xf] %vm660_vm2, %v795_v21  ;;  %v606_v26 = vadd.f32 %v605_v20, %v541_v23  ;;  %v544_v27 = vadd.f32 %v833_v22, %v1050_v45  ;;  %v610_v28 = vpop.f32.mrb[11].mxu1 }
 0x112   : > { %v624_v29 = vmax.f32 %v606_v26, 0.0  ;;  %v609_v30 = vadd.f32 %v608_v25, %v544_v27  ;;  %v834_v31 = vpop.f32.mrb[12].mxu0 }
 0x113   : > { %v835_v32 = vpop.f32.mrb[13].mxu0 }
 0x114   : > { %v796_v33 = vpack.c.bf16 %v624_v29, %v624_v29  ;;  %v625_v34 = vmax.f32 %v609_v30, 0.0  ;;  %v836_v35 = vadd.f32 %v835_v32, %v834_v31  ;;  %v837_v36 = vpop.f32.mrb[14].mxu0 }
 0x115   : > { %v838_v37 = vpop.f32.mrb[15].mxu0  ;;  %v613_v38 = vpop.f32.mrb[12].mxu1 }
 0x116   : > { %665 = vst.msk [vmem:[%s1058_s23 + $0x10] sm:$0xf] %vm660_vm2, %v796_v33  ;;  %v797_v39 = vpack.c.bf16 %v625_v34, %v625_v34  ;;  %v839_v40 = vadd.f32 %v838_v37, %v837_v36  ;;  %v549_v41 = vadd.f32 %v836_v35, %v1050_v45  ;;  %v615_v42 = vpop.f32.mrb[13].mxu1 }
 0x117   : > { %v616_v43 = vpop.f32.mrb[14].mxu1 }
 0x118   : > { %666 = vst.msk [vmem:[%s1058_s23 + $0x14] sm:$0xf] %vm660_vm2, %v797_v39  ;;  %v614_v44 = vadd.f32 %v613_v38, %v549_v41  ;;  %v552_v46 = vadd.f32 %v839_v40, %v1050_v45  ;;  %v618_v47 = vpop.f32.mrb[15].mxu1 }
 0x11a   : > { %v626_v48 = vmax.f32 %v614_v44, 0.0  ;;  %v617_v49 = vadd.f32 %v616_v43, %v552_v46 }
 0x11c   : > { %v798_v50 = vpack.c.bf16 %v626_v48, %v626_v48  ;;  %v627_v51 = vmax.f32 %v617_v49, 0.0 }
 0x11e   : > { %667 = vst.msk [vmem:[%s1058_s23 + $0x18] sm:$0xf] %vm660_vm2, %v798_v50  ;;  %v799_v52 = vpack.c.bf16 %v627_v51, %v627_v51 }
 0x120   : > { %668 = vst.msk [vmem:[%s1058_s23 + $0x1c] sm:$0xf] %vm660_vm2, %v799_v52 }
 0x121 PF: > { %s13_s12 = sadd.s32 1, %s904_s12  }
 0x122   : > { %p10_p4 = scmp.ge.s32.totalorder %s13_s12, 4  }
 0x124   :  { %12 = sbr.rel (!%p10_p4) target bundleno = 1 (0x1), region = 62 }

</bundles_post_ra>
